<compile_context>
chip_gen: v7x
topology: tpu7x:2x2x1
jax: 0.10.0
libtpu: 0.0.40
codegen_flags: <defaults>
</compile_context>

<pallas_src>
import functools

import jax
import jax.numpy as jnp
from jax.experimental import pallas as pl
from jax.experimental.pallas import tpu as pltpu

_LANE = 128


def _round_up(n, m):
    return ((n + m - 1) // m) * m


def _vmem_capacity_bytes():
    """Per-core VMEM capacity; conservative 64 MiB (v7x) fallback."""
    try:
        return int(pltpu.get_tpu_info().vmem_capacity_bytes)
    except Exception:
        return 64 * 1024 * 1024


def _mlp_kernel(x_ref, w0_ref, b0_ref, w1_ref, b1_ref, w2_ref, b2_ref, o_ref):
    """Fused relu(relu(x@W0+b0)@W1+b1)@W2+b2 with f32 MXU accumulation."""
    # Cast folded into the kernel: x arrives in its original dtype (f32) and is
    # cast to the weight/compute dtype on the VPU -- no wrapper cast pass.
    x = x_ref[...].astype(w0_ref.dtype)
    h0 = jnp.dot(x, w0_ref[...], preferred_element_type=jnp.float32) + b0_ref[...]
    h0 = jnp.maximum(h0, 0.0).astype(w1_ref.dtype)
    h1 = jnp.dot(h0, w1_ref[...], preferred_element_type=jnp.float32) + b1_ref[...]
    h1 = jnp.maximum(h1, 0.0).astype(w2_ref.dtype)
    q = jnp.dot(h1, w2_ref[...], preferred_element_type=jnp.float32) + b2_ref[...]
    o_ref[...] = q.astype(o_ref.dtype)


def prepare_params(params, compute_dtype=jnp.float32):
    """One-time parameter prep (call OUTSIDE jit, reuse across forward calls).

    - transpose PyTorch (out, in) Linear weights to (in, out)
    - cast weight matrices to compute_dtype (bf16 halves weight HBM traffic)
    - keep biases in f32 as (1, out): bias-add / ReLU stay in the f32 accumulator
    - zero-pad hidden dims and the output dim to lane-dense multiples of 128
      (exact through the ReLUs: padded columns/rows stay identically zero)
    Returns (prepared_dict, num_actions).
    """
    w0 = params["w0"].T.astype(compute_dtype)  # (in_dim, h0)
    w1 = params["w1"].T.astype(compute_dtype)  # (h0, h1)
    w2 = params["w2"].T.astype(compute_dtype)  # (h1, num_actions)
    b0 = params["b0"].astype(jnp.float32)[None, :]
    b1 = params["b1"].astype(jnp.float32)[None, :]
    b2 = params["b2"].astype(jnp.float32)[None, :]

    h0_dim, h1_dim = w0.shape[1], w1.shape[1]
    num_actions = w2.shape[1]
    h0_pad = _round_up(h0_dim, _LANE)
    h1_pad = _round_up(h1_dim, _LANE)
    n_pad = _round_up(num_actions, _LANE)

    w0 = jnp.pad(w0, ((0, 0), (0, h0_pad - h0_dim)))
    b0 = jnp.pad(b0, ((0, 0), (0, h0_pad - h0_dim)))
    w1 = jnp.pad(w1, ((0, h0_pad - h0_dim), (0, h1_pad - h1_dim)))
    b1 = jnp.pad(b1, ((0, 0), (0, h1_pad - h1_dim)))
    w2 = jnp.pad(w2, ((0, h1_pad - h1_dim), (0, n_pad - num_actions)))
    b2 = jnp.pad(b2, ((0, 0), (0, n_pad - num_actions)))

    prepared = dict(w0=w0, b0=b0, w1=w1, b1=b1, w2=w2, b2=b2)
    return prepared, num_actions


@functools.partial(jax.jit, static_argnames=("num_actions", "block_b"))
def fc_action_value_forward(x, prepared, num_actions, block_b=None):
    """FCActionValue forward pass.

    x:        (B, *feature_dims) -> flattened to (B, in_dim) like x.view(B, -1)
    prepared: output of prepare_params (pre-transposed / lane-padded weights)
    returns   (q_values (B, num_actions) float32, state=None)
    """
    w0, b0 = prepared["w0"], prepared["b0"]
    w1, b1 = prepared["w1"], prepared["b1"]
    w2, b2 = prepared["w2"], prepared["b2"]

    B = x.shape[0]
    if not jnp.issubdtype(x.dtype, jnp.floating):
        x = x.astype(jnp.float32)  # matches torch x.float() for non-float inputs
    x2d = x.reshape(B, -1)         # x.view(B, -1); dtype cast happens in-kernel

    in_dim = x2d.shape[1]
    h0_dim, h1_dim, n_pad = w0.shape[1], w1.shape[1], w2.shape[1]

    compute_dtype = w0.dtype
    out_dtype = compute_dtype      # bf16 writeback in bf16 mode; f32 otherwise
    x_isz = x2d.dtype.itemsize
    c_isz = compute_dtype.itemsize
    out_isz = jnp.dtype(out_dtype).itemsize
    pack = {1: 32, 2: 16, 4: 8}.get(c_isz, 8)   # sublane pack of compute dtype

    weight_bytes = sum(int(a.size) * a.dtype.itemsize
                       for a in (w0, b0, w1, b1, w2, b2))
    # Per-row VMEM cost of one batch tile: double-buffered x and out tiles, the
    # in-kernel cast copy of x, and the f32 intermediates plus their cast copies.
    per_row_bytes = (
        2 * in_dim * x_isz
        + in_dim * c_isz
        + (h0_dim + h1_dim) * (4 + c_isz)
        + 2 * n_pad * out_isz
    )
    resident_bytes = 2 * weight_bytes   # constant-index weights (counted 2x)

    vmem_cap = _vmem_capacity_bytes()                     # 128 MiB v5e/v6e, 64 MiB v7x
    vmem_budget = max(8 * 1024 * 1024, vmem_cap - 8 * 1024 * 1024)

    # --- batch tile: fill the MXU M dim, but stay inside the per-generation
    # VMEM budget and keep >=4 grid steps for larger batches so v7x's two
    # TensorCores each retain prefetch/compute overlap.
    if block_b is None:
        fit = (vmem_budget - resident_bytes) // per_row_bytes
        fit = max(pack, (int(fit) // pack) * pack)
        if B <= 2 * pack:
            block_b = _round_up(B, pack)                  # tiny batch: one step
        else:
            block_b = _round_up(pl.cdiv(B, 4), pack)      # >=4 steps (>=2 per TC)
        block_b = min(block_b, 512, fit)
    block_b = max(pack, _round_up(int(block_b), pack))    # validate user block_b

    num_blocks = pl.cdiv(B, block_b)
    rows_exec = num_blocks * block_b

    # Advisory cost hint for the XLA scheduler around this custom call.
    cost = pl.CostEstimate(
        flops=2 * rows_exec * (in_dim * h0_dim + h0_dim * h1_dim + h1_dim * n_pad),
        transcendentals=0,
        bytes_accessed=B * in_dim * x_isz + B * n_pad * out_isz + weight_bytes,
    )

    vmem_bytes = block_b * per_row_bytes + resident_bytes
    compiler_kwargs = {"dimension_semantics": ("parallel",)}
    if vmem_bytes > 12 * 1024 * 1024:
        # Generation-aware cap: never request more than capacity - 8 MiB.
        compiler_kwargs["vmem_limit_bytes"] = int(
            min(max(vmem_bytes + vmem_bytes // 2, 16 * 1024 * 1024), vmem_budget)
        )

    # No jnp.pad of x for ragged batches: the last (partial) block's OOB rows
    # are garbage on load and masked on store; rows are independent end-to-end.
    q_padded = pl.pallas_call(
        _mlp_kernel,
        out_shape=jax.ShapeDtypeStruct((B, n_pad), out_dtype),
        grid_spec=pltpu.PrefetchScalarGridSpec(
            num_scalar_prefetch=0,
            grid=(num_blocks,),
            in_specs=[
                # batch tile of activations (original dtype; cast in-kernel)
                pl.BlockSpec((block_b, in_dim), lambda i: (i, 0)),
                # weights / biases: full arrays, same block every step (resident)
                pl.BlockSpec((in_dim, h0_dim), lambda i: (0, 0)),
                pl.BlockSpec((1, h0_dim), lambda i: (0, 0)),
                pl.BlockSpec((h0_dim, h1_dim), lambda i: (0, 0)),
                pl.BlockSpec((1, h1_dim), lambda i: (0, 0)),
                pl.BlockSpec((h1_dim, n_pad), lambda i: (0, 0)),
                pl.BlockSpec((1, n_pad), lambda i: (0, 0)),
            ],
            out_specs=pl.BlockSpec((block_b, n_pad), lambda i: (i, 0)),
        ),
        compiler_params=pltpu.CompilerParams(**compiler_kwargs),
        cost_estimate=cost,
    )(x2d, w0, b0, w1, b1, w2, b2)

    q = q_padded[:, :num_actions].astype(jnp.float32)
    state = None
    return q, state


def init_params(key, in_dim, h, num_actions):
    """Deterministic init mimicking torch.nn.Linear default (uniform +-1/sqrt(fan_in))."""
    dims = [in_dim] + list(h) + [num_actions]
    params = {}
    for idx, (fan_in, fan_out) in enumerate(zip(dims[:-1], dims[1:])):
        key, kw, kb = jax.random.split(key, 3)
        bound = 1.0 / jnp.sqrt(float(fan_in))
        # PyTorch Linear layout: weight (out, in), bias (out,)
        params[f"w{idx}"] = jax.random.uniform(
            kw, (fan_out, fan_in), jnp.float32, -bound, bound
        )
        params[f"b{idx}"] = jax.random.uniform(
            kb, (fan_out,), jnp.float32, -bound, bound
        )
    return params


def reference_forward(x, params):
    """Plain-JAX f32 reference of the same forward pass (for sanity checking)."""
    B = x.shape[0]
    x2d = x.astype(jnp.float32).reshape(B, -1)
    h = jnp.maximum(x2d @ params["w0"].T + params["b0"], 0.0)
    h = jnp.maximum(h @ params["w1"].T + params["b1"], 0.0)
    return h @ params["w2"].T + params["b2"]


if __name__ == "__main__":
    # FCActionValue(in_dim=32, num_actions=8, h=(32, 32))
    in_dim = 32
    h = (32, 32)
    num_actions = 8

    key = jax.random.PRNGKey(0)
    params = init_params(key, in_dim, h, num_actions)

    # ---- f32 path (matches PyTorch numerics), batch=16, single grid step.
    key, kx = jax.random.split(key)
    x = jax.random.normal(kx, (16, 4, 8), dtype=jnp.float32)  # flattens to (16, 32)
    prep_f32, na = prepare_params(params, jnp.float32)

    q, state = fc_action_value_forward(x, prep_f32, na)
    q = jax.block_until_ready(q)
    q_ref = reference_forward(x, params)
    assert q.shape == (16, num_actions)
    assert state is None
    assert jnp.allclose(q, q_ref, atol=1e-5, rtol=1e-5), "f32 mismatch vs reference"

    # ---- ragged batch (13 rows) with a forced small tile: exercises the
    # cdiv grid + partial edge block (no x padding) + output-slice path.
    key, kx2 = jax.random.split(key)
    x_ragged = jax.random.normal(kx2, (13, 4, 8), dtype=jnp.float32)
    q2, _ = fc_action_value_forward(x_ragged, prep_f32, na, block_b=8)
    q2 = jax.block_until_ready(q2)
    assert q2.shape == (13, num_actions)
    assert jnp.allclose(
        q2, reference_forward(x_ragged, params), atol=1e-5, rtol=1e-5
    ), "ragged-batch mismatch vs reference"

    # ---- bf16 weights + bf16 writeback (f32 MXU accumulation); x stays f32 in
    # HBM and is cast on the VPU inside the kernel; looser tolerance.
    prep_bf16, _ = prepare_params(params, jnp.bfloat16)
    q3, _ = fc_action_value_forward(x, prep_bf16, na)
    q3 = jax.block_until_ready(q3)
    assert q3.dtype == jnp.float32
    assert jnp.allclose(q3, q_ref, atol=5e-2, rtol=5e-2), "bf16 mismatch vs reference"

    print("KERNEL_OK")
</pallas_src>

<mosaic_0001>
module attributes {stable_mosaic.version = 11 : i64} {
  func.func @_mlp_kernel(%arg0: i32, %arg1: memref<16x32xf32, #tpu.memory_space<vmem>>, %arg2: memref<32x128xf32, #tpu.memory_space<vmem>>, %arg3: memref<1x128xf32, #tpu.memory_space<vmem>>, %arg4: memref<128x128xf32, #tpu.memory_space<vmem>>, %arg5: memref<1x128xf32, #tpu.memory_space<vmem>>, %arg6: memref<128x128xf32, #tpu.memory_space<vmem>>, %arg7: memref<1x128xf32, #tpu.memory_space<vmem>>, %arg8: memref<16x128xf32, #tpu.memory_space<vmem>>) attributes {dimension_semantics = [#tpu.dimension_semantics<parallel>], iteration_bounds = array<i64: 1>, scalar_prefetch = 0 : i64, scratch_operands = 0 : i64, tpu.core_type = #tpu.core_type<tc>, window_params = [{transform_indices = @transform_0, window_bounds = array<i64: 16, 32>}, {pipeline_mode = #tpu.pipeline_mode<synchronous>, transform_indices = @transform_1, window_bounds = array<i64: 32, 128>}, {pipeline_mode = #tpu.pipeline_mode<synchronous>, transform_indices = @transform_2, window_bounds = array<i64: 1, 128>}, {pipeline_mode = #tpu.pipeline_mode<synchronous>, transform_indices = @transform_3, window_bounds = array<i64: 128, 128>}, {pipeline_mode = #tpu.pipeline_mode<synchronous>, transform_indices = @transform_4, window_bounds = array<i64: 1, 128>}, {pipeline_mode = #tpu.pipeline_mode<synchronous>, transform_indices = @transform_5, window_bounds = array<i64: 128, 128>}, {pipeline_mode = #tpu.pipeline_mode<synchronous>, transform_indices = @transform_6, window_bounds = array<i64: 1, 128>}, {transform_indices = @transform_7, window_bounds = array<i64: 16, 128>}]} {
    %c0 = arith.constant 0 : index
    %c0_0 = arith.constant 0 : index
    %0 = vector.load %arg1[%c0, %c0_0] : memref<16x32xf32, #tpu.memory_space<vmem>>, vector<16x32xf32>
    %c0_1 = arith.constant 0 : index
    %c0_2 = arith.constant 0 : index
    %1 = vector.load %arg2[%c0_1, %c0_2] : memref<32x128xf32, #tpu.memory_space<vmem>>, vector<32x128xf32>
    %cst = arith.constant dense<0.000000e+00> : vector<16x128xf32>
    %2 = tpu.matmul %0, %1, %cst {dimension_numbers = #tpu.dot_dimension_numbers<[1], [0], [0], [1], [0, 0, 1, 1], [], []>} : vector<16x32xf32>, vector<32x128xf32>, vector<16x128xf32> -> vector<16x128xf32>
    %c0_3 = arith.constant 0 : index
    %c0_4 = arith.constant 0 : index
    %3 = vector.load %arg3[%c0_3, %c0_4] : memref<1x128xf32, #tpu.memory_space<vmem>>, vector<1x128xf32>
    %4 = vector.broadcast %3 : vector<1x128xf32> to vector<16x128xf32>
    %5 = arith.addf %2, %4 : vector<16x128xf32>
    %cst_5 = arith.constant 0.000000e+00 : f32
    %6 = vector.broadcast %cst_5 : f32 to vector<16x128xf32>
    %7 = arith.maximumf %5, %6 : vector<16x128xf32>
    %c0_6 = arith.constant 0 : index
    %c0_7 = arith.constant 0 : index
    %8 = vector.load %arg4[%c0_6, %c0_7] : memref<128x128xf32, #tpu.memory_space<vmem>>, vector<128x128xf32>
    %cst_8 = arith.constant dense<0.000000e+00> : vector<16x128xf32>
    %9 = tpu.matmul %7, %8, %cst_8 {dimension_numbers = #tpu.dot_dimension_numbers<[1], [0], [0], [1], [0, 0, 1, 1], [], []>} : vector<16x128xf32>, vector<128x128xf32>, vector<16x128xf32> -> vector<16x128xf32>
    %c0_9 = arith.constant 0 : index
    %c0_10 = arith.constant 0 : index
    %10 = vector.load %arg5[%c0_9, %c0_10] : memref<1x128xf32, #tpu.memory_space<vmem>>, vector<1x128xf32>
    %11 = vector.broadcast %10 : vector<1x128xf32> to vector<16x128xf32>
    %12 = arith.addf %9, %11 : vector<16x128xf32>
    %cst_11 = arith.constant 0.000000e+00 : f32
    %13 = vector.broadcast %cst_11 : f32 to vector<16x128xf32>
    %14 = arith.maximumf %12, %13 : vector<16x128xf32>
    %c0_12 = arith.constant 0 : index
    %c0_13 = arith.constant 0 : index
    %15 = vector.load %arg6[%c0_12, %c0_13] : memref<128x128xf32, #tpu.memory_space<vmem>>, vector<128x128xf32>
    %cst_14 = arith.constant dense<0.000000e+00> : vector<16x128xf32>
    %16 = tpu.matmul %14, %15, %cst_14 {dimension_numbers = #tpu.dot_dimension_numbers<[1], [0], [0], [1], [0, 0, 1, 1], [], []>} : vector<16x128xf32>, vector<128x128xf32>, vector<16x128xf32> -> vector<16x128xf32>
    %c0_15 = arith.constant 0 : index
    %c0_16 = arith.constant 0 : index
    %17 = vector.load %arg7[%c0_15, %c0_16] : memref<1x128xf32, #tpu.memory_space<vmem>>, vector<1x128xf32>
    %18 = vector.broadcast %17 : vector<1x128xf32> to vector<16x128xf32>
    %19 = arith.addf %16, %18 : vector<16x128xf32>
    %c0_17 = arith.constant 0 : index
    %c0_18 = arith.constant 0 : index
    %20 = vector.load %arg8[%c0_17, %c0_18] : memref<16x128xf32, #tpu.memory_space<vmem>>, vector<16x128xf32>
    tpu.vector_store %arg8[%c0_17, %c0_18], %19 {strides = array<i32>} : memref<16x128xf32, #tpu.memory_space<vmem>>, vector<16x128xf32>,
    return
  }
  func.func @transform_0(%arg0: i32) -> (i32, i32) {
    %c0_i32 = arith.constant 0 : i32
    %c0_i32_0 = arith.constant 0 : i32
    return %arg0, %c0_i32 : i32, i32
  }
  func.func @transform_1(%arg0: i32) -> (i32, i32) {
    %c0_i32 = arith.constant 0 : i32
    %c0_i32_0 = arith.constant 0 : i32
    %c0_i32_1 = arith.constant 0 : i32
    return %c0_i32, %c0_i32_0 : i32, i32
  }
  func.func @transform_2(%arg0: i32) -> (i32, i32) {
    %c0_i32 = arith.constant 0 : i32
    %c0_i32_0 = arith.constant 0 : i32
    %c0_i32_1 = arith.constant 0 : i32
    return %c0_i32, %c0_i32_0 : i32, i32
  }
  func.func @transform_3(%arg0: i32) -> (i32, i32) {
    %c0_i32 = arith.constant 0 : i32
    %c0_i32_0 = arith.constant 0 : i32
    %c0_i32_1 = arith.constant 0 : i32
    return %c0_i32, %c0_i32_0 : i32, i32
  }
  func.func @transform_4(%arg0: i32) -> (i32, i32) {
    %c0_i32 = arith.constant 0 : i32
    %c0_i32_0 = arith.constant 0 : i32
    %c0_i32_1 = arith.constant 0 : i32
    return %c0_i32, %c0_i32_0 : i32, i32
  }
  func.func @transform_5(%arg0: i32) -> (i32, i32) {
    %c0_i32 = arith.constant 0 : i32
    %c0_i32_0 = arith.constant 0 : i32
    %c0_i32_1 = arith.constant 0 : i32
    return %c0_i32, %c0_i32_0 : i32, i32
  }
  func.func @transform_6(%arg0: i32) -> (i32, i32) {
    %c0_i32 = arith.constant 0 : i32
    %c0_i32_0 = arith.constant 0 : i32
    %c0_i32_1 = arith.constant 0 : i32
    return %c0_i32, %c0_i32_0 : i32, i32
  }
  func.func @transform_7(%arg0: i32) -> (i32, i32) {
    %c0_i32 = arith.constant 0 : i32
    %c0_i32_0 = arith.constant 0 : i32
    return %arg0, %c0_i32 : i32, i32
  }
}

</mosaic_0001>

<bundles_post_ra>
// kernel: fc_action_value_forward.1
= control target key start
LH: loop header
LB: loop body
LE: loop exit
PB: predicated region body
PF: predicated region fallthrough
CT: control target
= control target key end

     0   :  { %12 = vsyncpa [#allocation3], 0  ;;  %s712_s0 = inlined_call_operand.vmem [shape: f32[16,32], index: 0, kind: input, shape index: {}]   ;;  %s713_s1 = inlined_call_operand.vmem [shape: f32[32,128], index: 1, kind: input, shape index: {}]   ;;  %s714_s2 = inlined_call_operand.vmem [shape: f32[1,128], index: 2, kind: input, shape index: {}]   ;;  %s715_s3 = inlined_call_operand.hbm [shape: f32[128,128], index: 3, kind: input, shape index: {}]   ;;  %s716_s4 = inlined_call_operand.vmem [shape: f32[1,128], index: 4, kind: input, shape index: {}]   ;;  %s717_s5 = inlined_call_operand.hbm [shape: f32[128,128], index: 5, kind: input, shape index: {}]   ;;  %s718_s6 = inlined_call_operand.vmem [shape: f32[1,128], index: 6, kind: input, shape index: {}]   ;;  %s719_s7 = inlined_call_operand.vmem [shape: f32[16,128], index: 7, kind: output, shape index: {}]  }
   0x1   :  { %13 = vsyncpa [#allocation5], 0  ;;  %s609_s24 = smov [#allocation2]   ;;  %s561_s28 = scalar_lea.hbm %s715_s3, 2048 }
   0x2   :  { %s25_s25 = sshll.u32 %s609_s24, 4  ;;  %p562_p0 = scmp.ne.s32.totalorder %s715_s3, %s561_s28  ;;  %s26_s25 = int_to_ptr.vmem [resolvable:$true] %s25_s25 }
   0x3   :  { %p565_p1 = scmp.lt.u32.totalorder %s561_s28, %s715_s3 }
   0x5   :  { %p567_p2 = pnand %p565_p1, %p562_p0 }
   0x7   :  { %570 = shalt.err (!%p567_p2)
}
   0x8   :  { %s571_s10 = scalar_lea.vmem %s26_s25, 2048  ;;  %p576_p4 = scmp.lt.s32.totalorder %s26_s25, %s26_s25 }
   0x9   :  { %p572_p3 = scmp.ne.s32.totalorder %s26_s25, %s571_s10  ;;  %p577_p5 = scmp.lt.s32.totalorder %s571_s10, %s571_s10 }
   0xb   :  { %p578_p6 = por %p577_p5, %p576_p4 }
   0xd   :  { %p579_p7 = pnand %p578_p6, %p572_p3 }
   0xf   :  { %582 = shalt.err (!%p579_p7)
}
  0x10   :  { %s610_s11 = smov 128   ;;  %s611_s12 = smov 8  }
  0x11   :  { %31 = dma.hbm_to_vmem [thread:$0]  %s715_s3, 2048, %s26_s25, [#allocation3], %s610_s11, %s610_s11, %s611_s12  }
  0x12   :  { %s612_s15 = smov [#allocation4]   ;;  %s583_s19 = scalar_lea.hbm %s717_s5, 2048 }
  0x13   :  { %s39_s16 = sshll.u32 %s612_s15, 4  ;;  %p584_p8 = scmp.ne.s32.totalorder %s717_s5, %s583_s19  ;;  %s40_s16 = int_to_ptr.vmem [resolvable:$true] %s39_s16 }
  0x14   :  { %p587_p9 = scmp.lt.u32.totalorder %s583_s19, %s717_s5 }
  0x16   :  { %p589_p10 = pnand %p587_p9, %p584_p8 }
  0x18   :  { %592 = shalt.err (!%p589_p10)
}
  0x19   :  { %s593_s24 = scalar_lea.vmem %s40_s16, 2048  ;;  %p598_p12 = scmp.lt.s32.totalorder %s40_s16, %s40_s16 }
  0x1a   :  { %p594_p11 = scmp.ne.s32.totalorder %s40_s16, %s593_s24  ;;  %p599_p13 = scmp.lt.s32.totalorder %s593_s24, %s593_s24 }
  0x1c   :  { %p600_p0 = por %p599_p13, %p598_p12 }
  0x1e   :  { %p601_p1 = pnand %p600_p0, %p594_p11 }
  0x20   :  { %604 = shalt.err (!%p601_p1)
}
  0x21   :  { %45 = dma.hbm_to_vmem [thread:$0]  %s717_s5, 2048, %s40_s16, [#allocation5], %s610_s11, %s610_s11, %s611_s12  }
  0x22   :  { %605 = dma.done.wait [#allocation3], 2048  }
  0x23   :  { %606 = vsyncadd [#allocation3], 4294965248 }
  0x24   :  { %607 = dma.done.wait [#allocation5], 2048  }
  0x25   :  { %608 = vsyncadd [#allocation5], 4294965248  ;;  %vm67_vm0 = vcmask 261120   ;;  %v56_v0 = vld [vmem:[%s713_s1] sm:$0xff]  ;;  %v57_v1 = vld [vmem:[%s713_s1 + $0x8] sm:$0xff] }
  0x26   :  { %v58_v2 = vld [vmem:[%s713_s1 + $0x10] sm:$0xff]  ;;  %v485_v3 = vpack.c.bf16 %v57_v1, %v56_v0  ;;  %v59_v4 = vld [vmem:[%s713_s1 + $0x18] sm:$0xff]  ;;  %v54_v5 = vld [vmem:[%s712_s0] sm:$0xff] }
  0x27   :  { %v489_v6 = vpack.c.bf16 %v59_v4, %v58_v2  ;;  %412 = vmatprep.mubr.msk.f32.mxu0 %vm67_vm0, %v54_v5  ;;  %v151_v7 = vld [vmem:[#allocation2] sm:$0xff]  ;;  %v152_v8 = vld [vmem:[#allocation2 + $0x8] sm:$0xff]  ;;  %v153_v9 = vld [vmem:[#allocation2 + $0x10] sm:$0xff] }
  0x28   :  { %486 = vmatprep.subr.bf16.mxu0 %v485_v3  ;;  %v493_v10 = vpack.c.bf16 %v152_v8, %v151_v7  ;;  %v154_v11 = vld [vmem:[#allocation2 + $0x18] sm:$0xff]  ;;  %v155_v13 = vld [vmem:[#allocation2 + $0x20] sm:$0xff]  ;;  %v156_v14 = vld [vmem:[#allocation2 + $0x28] sm:$0xff] }
  0x29   :  { %488 = vmatpush3.bf16.msra.mxu0 %v485_v3  ;;  %v497_v12 = vpack.c.bf16 %v154_v11, %v153_v9  ;;  %v501_v15 = vpack.c.bf16 %v156_v14, %v155_v13  ;;  %v55_v16 = vld [vmem:[%s712_s0 + $0x8] sm:$0xff]  ;;  %v157_v17 = vld [vmem:[#allocation2 + $0x30] sm:$0xff]  ;;  %v158_v18 = vld [vmem:[#allocation2 + $0x38] sm:$0xff] }
  0x2a   :  { %490 = vmatprep.subr.bf16.mxu0 %v489_v6  ;;  %494 = vmatprep.subr.bf16.mxu1 %v493_v10  ;;  %v505_v19 = vpack.c.bf16 %v158_v18, %v157_v17  ;;  %v159_v20 = vld [vmem:[#allocation2 + $0x40] sm:$0xff]  ;;  %v160_v21 = vld [vmem:[#allocation2 + $0x48] sm:$0xff]  ;;  %v161_v23 = vld [vmem:[#allocation2 + $0x50] sm:$0xff] }
  0x2b   :  { %496 = vmatpush3.bf16.msra.mxu1 %v493_v10  ;;  %v509_v22 = vpack.c.bf16 %v160_v21, %v159_v20  ;;  %v162_v24 = vld [vmem:[#allocation2 + $0x58] sm:$0xff]  ;;  %v163_v26 = vld [vmem:[#allocation2 + $0x60] sm:$0xff]  ;;  %v164_v27 = vld [vmem:[#allocation2 + $0x68] sm:$0xff] }
  0x2c   :  { %498 = vmatprep.subr.bf16.mxu1 %v497_v12  ;;  %v513_v25 = vpack.c.bf16 %v162_v24, %v161_v23  ;;  %v517_v28 = vpack.c.bf16 %v164_v27, %v163_v26  ;;  %v165_v29 = vld [vmem:[#allocation2 + $0x70] sm:$0xff]  ;;  %v166_v30 = vld [vmem:[#allocation2 + $0x78] sm:$0xff]  ;;  %v251_v32 = vld [vmem:[#allocation4] sm:$0xff] }
  0x2d   :  { %492 = vmatpush3.bf16.msra.mxu0 %v489_v6  ;;  %v521_v31 = vpack.c.bf16 %v166_v30, %v165_v29  ;;  %v252_v33 = vld [vmem:[#allocation4 + $0x8] sm:$0xff]  ;;  %v253_v34 = vld [vmem:[#allocation4 + $0x10] sm:$0xff]  ;;  %v254_v36 = vld [vmem:[#allocation4 + $0x18] sm:$0xff] }
  0x2e   :  { %v525_v35 = vpack.c.bf16 %v252_v33, %v251_v32  ;;  %v529_v37 = vpack.c.bf16 %v254_v36, %v253_v34  ;;  %v255_v38 = vld [vmem:[#allocation4 + $0x20] sm:$0xff]  ;;  %v256_v39 = vld [vmem:[#allocation4 + $0x28] sm:$0xff]  ;;  %v257_v41 = vld [vmem:[#allocation4 + $0x30] sm:$0xff] }
  0x2f   :  { %500 = vmatpush3.bf16.msra.mxu1 %v497_v12  ;;  %v533_v40 = vpack.c.bf16 %v256_v39, %v255_v38  ;;  %v258_v42 = vld [vmem:[#allocation4 + $0x38] sm:$0xff]  ;;  %v259_v44 = vld [vmem:[#allocation4 + $0x40] sm:$0xff]  ;;  %v260_v45 = vld [vmem:[#allocation4 + $0x48] sm:$0xff] }
  0x30   :  { %413 = vmatmul.mubr.msk.f32.vlgmr.msra.gmra.mrb[0].mxu0 %vm67_vm0, %v55_v16  ;;  %502 = vmatprep.subr.bf16.mxu1 %v501_v15  ;;  %v537_v43 = vpack.c.bf16 %v258_v42, %v257_v41  ;;  %v541_v46 = vpack.c.bf16 %v260_v45, %v259_v44  ;;  %v261_v47 = vld [vmem:[#allocation4 + $0x50] sm:$0xff]  ;;  %v262_v48 = vld [vmem:[#allocation4 + $0x58] sm:$0xff]  ;;  %v263_v50 = vld [vmem:[#allocation4 + $0x60] sm:$0xff] }
  0x31   :  { %526 = vmatprep.subr.bf16.mxu0 %v525_v35  ;;  %v545_v49 = vpack.c.bf16 %v262_v48, %v261_v47  ;;  %v264_v51 = vld [vmem:[#allocation4 + $0x68] sm:$0xff]  ;;  %v357_v53 = vld [vmem:[%s714_s2] ss:$0 sm:$0xff]  ;;  %v265_v60 = vld [vmem:[#allocation4 + $0x70] sm:$0xff] }
  0x32   :  { %528 = vmatpush3.bf16.msra.mxu0 %v525_v35  ;;  %v549_v52 = vpack.c.bf16 %v264_v51, %v263_v50  ;;  %v266_v61 = vld [vmem:[#allocation4 + $0x78] sm:$0xff]  ;;  %v360_v63 = vld [vmem:[%s716_s4] ss:$0 sm:$0xff] }
  0x33   :  { %504 = vmatpush3.bf16.msra.mxu1 %v501_v15  ;;  %530 = vmatprep.subr.bf16.mxu0 %v529_v37  ;;  %v553_v62 = vpack.c.bf16 %v266_v61, %v265_v60  ;;  %v361_v6 = vld [vmem:[%s718_s6] ss:$0 sm:$0xff] }
  0x34   :  { %506 = vmatprep.subr.bf16.mxu1 %v505_v19 }
  0x36   :  { %532 = vmatpush3.bf16.msra.mxu0 %v529_v37 }
  0x37   :  { %508 = vmatpush3.bf16.msra.mxu1 %v505_v19  ;;  %534 = vmatprep.subr.bf16.mxu0 %v533_v40 }
  0x38   :  { %510 = vmatprep.subr.bf16.mxu1 %v509_v22 }
  0x3a   :  { %536 = vmatpush3.bf16.msra.mxu0 %v533_v40 }
  0x3b   :  { %512 = vmatpush3.bf16.msra.mxu1 %v509_v22  ;;  %538 = vmatprep.subr.bf16.mxu0 %v537_v43 }
  0x3c   :  { %514 = vmatprep.subr.bf16.mxu1 %v513_v25 }
  0x3e   :  { %540 = vmatpush3.bf16.msra.mxu0 %v537_v43 }
  0x3f   :  { %516 = vmatpush3.bf16.msra.mxu1 %v513_v25  ;;  %542 = vmatprep.subr.bf16.mxu0 %v541_v46 }
  0x40   :  { %518 = vmatprep.subr.bf16.mxu1 %v517_v28 }
  0x42   :  { %544 = vmatpush3.bf16.msra.mxu0 %v541_v46 }
  0x43   :  { %520 = vmatpush3.bf16.msra.mxu1 %v517_v28  ;;  %546 = vmatprep.subr.bf16.mxu0 %v545_v49 }
  0x44   :  { %522 = vmatprep.subr.bf16.mxu1 %v521_v31 }
  0x46   :  { %548 = vmatpush3.bf16.msra.mxu0 %v545_v49 }
  0x47   :  { %524 = vmatpush3.bf16.msra.mxu1 %v521_v31  ;;  %550 = vmatprep.subr.bf16.mxu0 %v549_v52 }
  0x4a   :  { %552 = vmatpush3.bf16.msra.mxu0 %v549_v52 }
  0x4b   :  { %554 = vmatprep.subr.bf16.mxu0 %v553_v62 }
  0x4e   :  { %556 = vmatpush3.bf16.msra.mxu0 %v553_v62 }
 0x103   :  { %v414_v54 = vpop.f32.mrb[0].mxu0 }
 0x104   :  { %v146_v55 = vadd.f32 %v414_v54, %v357_v53  ;;  %v140_v56 = vpop.f32.mrb[1].mxu0 }
 0x105   :  { %v141_v57 = vadd.f32 %v357_v53, %v140_v56 }
 0x106   :  { %v150_v59 = vmax.f32 %v146_v55, 0.0 }
 0x107   :  { %v149_v58 = vmax.f32 %v141_v57, 0.0 }
 0x109   :  { %447 = vmatprep.mubr.f32.mxu1 %v149_v58 }
 0x10a   :  { %448 = vmatmul.mubr.f32.vlgmr.msra.gmra.mrb[0].mxu1 %v150_v59 }
 0x1dd   :  { %v449_v0 = vpop.f32.mrb[0].mxu1 }
 0x1de   :  { %v246_v1 = vadd.f32 %v449_v0, %v360_v63  ;;  %v240_v2 = vpop.f32.mrb[1].mxu1 }
 0x1df   :  { %v241_v3 = vadd.f32 %v360_v63, %v240_v2 }
 0x1e0   :  { %v250_v5 = vmax.f32 %v246_v1, 0.0 }
 0x1e1   :  { %v249_v4 = vmax.f32 %v241_v3, 0.0 }
 0x1e3   :  { %482 = vmatprep.mubr.f32.mxu0 %v249_v4 }
 0x1e4   :  { %483 = vmatmul.mubr.f32.vlgmr.msra.gmra.mrb[2].mxu0 %v250_v5 }
 0x2b7   :  { %v484_v7 = vpop.f32.mrb[2].mxu0 }
 0x2b8   :  { %v346_v8 = vadd.f32 %v484_v7, %v361_v6  ;;  %v340_v9 = vpop.f32.mrb[3].mxu0 }
 0x2b9   :  { %v341_v10 = vadd.f32 %v361_v6, %v340_v9 }
 0x2ba   :  { %350 = vst [vmem:[%s719_s7 + $0x8] sm:$0xff] %v346_v8 }
 0x2bb   :  { %349 = vst [vmem:[%s719_s7] sm:$0xff] %v341_v10 }
 0x2bc   :  { %355 = vsyncpa [#allocation3], 1 }
 0x2bd   :  { %356 = vsyncpa [#allocation5], 1 }

</bundles_post_ra>
